<compile_context>
chip_gen: v7x
topology: tpu7x:2x2x1
jax: 0.10.0
libtpu: 0.0.40
codegen_flags: <defaults>
</compile_context>

<pallas_src>
import functools
import math

import jax
import jax.numpy as jnp
from jax.experimental import pallas as pl
from jax.experimental.pallas import tpu as pltpu

LOG_SIG_MAX = 2.0
LOG_SIG_MIN = -20.0
HIDDEN = 256


def _round_up(x, m):
    return ((x + m - 1) // m) * m


def _policy_kernel(x_ref, w1_ref, b1_ref, w2_ref, b2_ref, wh_ref, bh_ref,
                   lo_ref, hi_ref, y_ref):
    # Cast activations to bf16 for the native MXU path; accumulate in f32.
    x = x_ref[...].astype(jnp.bfloat16)

    # layer 1: Linear(inp, 256) + ReLU
    h1 = jnp.dot(x, w1_ref[...], preferred_element_type=jnp.float32) + b1_ref[...]
    h1 = jnp.maximum(h1, 0.0).astype(jnp.bfloat16)

    # layer 2: Linear(256, 256) + ReLU
    h2 = jnp.dot(h1, w2_ref[...], preferred_element_type=jnp.float32) + b2_ref[...]
    h2 = jnp.maximum(h2, 0.0).astype(jnp.bfloat16)

    # fused heads: Linear(256, 2*out) -> [mean | log_std] in one MXU pass.
    heads = jnp.dot(h2, wh_ref[...], preferred_element_type=jnp.float32) + bh_ref[...]

    # Per-column clamp bounds: mean columns get (+-f32 max) and pass through,
    # log_std columns get [LOG_SIG_MIN, LOG_SIG_MAX].  Two VPU ops, no iota.
    heads = jnp.minimum(jnp.maximum(heads, lo_ref[...]), hi_ref[...])

    y_ref[...] = heads.astype(y_ref.dtype)


def gaussian_policy_flat(state, params, *, out, block_b=1024):
    """state: [B, inp] float -> (mean [B, out] f32, log_std [B, out] f32)."""
    w1, b1, w2, b2, wh, bh, lo, hi = params
    B, inp = state.shape
    n_out = wh.shape[1]  # == 2 * out

    # Batch tile: large to amortize per-step overhead, but ensure >= 2 grid
    # steps for big batches so the "parallel" axis can shard across the two
    # TensorCores on v7x (harmless single extra step on v5e/v6e).
    bb = min(block_b, _round_up(B, 8))
    if B >= 256 and pl.cdiv(B, bb) < 2:
        bb = _round_up(pl.cdiv(B, 2), 8)
    bb = max(8, bb)
    grid = (pl.cdiv(B, bb),)

    def const(shape):
        # Constant index_map -> the block is fetched once and stays VMEM-resident.
        return pl.BlockSpec(shape, lambda i: (0, 0))

    # TODO(synk): if the f32 output write ever dominates, emit y in bfloat16.
    y = pl.pallas_call(
        _policy_kernel,
        out_shape=jax.ShapeDtypeStruct((B, n_out), jnp.float32),
        grid=grid,
        in_specs=[
            pl.BlockSpec((bb, inp), lambda i: (i, 0)),   # batch tile of x (no padding)
            const(w1.shape), const(b1.shape),            # resident weights (~0.15 MiB bf16)
            const(w2.shape), const(b2.shape),
            const(wh.shape), const(bh.shape),
            const(lo.shape), const(hi.shape),
        ],
        out_specs=pl.BlockSpec((bb, n_out), lambda i: (i, 0)),
        compiler_params=pltpu.CompilerParams(
            dimension_semantics=("parallel",)),
    )(state, w1, b1, w2, b2, wh, bh, lo, hi)

    # y is already only 2*out columns wide and contiguous; split it.
    mean = y[:, :out]
    log_std = y[:, out:]
    return mean, log_std


def xavier_uniform(key, fan_in, fan_out, gain=1.0):
    # Matches torch.nn.init.xavier_uniform_ (gain=1): U(-a, a), a = gain*sqrt(6/(fan_in+fan_out))
    a = gain * math.sqrt(6.0 / (fan_in + fan_out))
    # stored as (in, out) so the kernel computes x @ W
    return jax.random.uniform(key, (fan_in, fan_out), jnp.float32, minval=-a, maxval=a)


def init_params(key, inp, out):
    k1, k2, k3, k4 = jax.random.split(key, 4)
    n_out = 2 * out

    # Weights in bf16 (native MXU dtype); biases stay f32 (added to f32 accum).
    w1 = xavier_uniform(k1, inp, HIDDEN).astype(jnp.bfloat16)
    b1 = jnp.zeros((1, HIDDEN), jnp.float32)      # constant_(bias, 0)
    w2 = xavier_uniform(k2, HIDDEN, HIDDEN).astype(jnp.bfloat16)
    b2 = jnp.zeros((1, HIDDEN), jnp.float32)

    # Fused heads: [Wm | Ws] -> (HIDDEN, 2*out); one MXU pass for both heads.
    wh = jnp.concatenate(
        [xavier_uniform(k3, HIDDEN, out), xavier_uniform(k4, HIDDEN, out)],
        axis=1).astype(jnp.bfloat16)
    bh = jnp.zeros((1, n_out), jnp.float32)

    # Per-column clamp bounds (mean columns unconstrained, log_std clamped).
    fmax = float(jnp.finfo(jnp.float32).max)
    lo = jnp.concatenate([jnp.full((1, out), -fmax, jnp.float32),
                          jnp.full((1, out), LOG_SIG_MIN, jnp.float32)], axis=1)
    hi = jnp.concatenate([jnp.full((1, out), fmax, jnp.float32),
                          jnp.full((1, out), LOG_SIG_MAX, jnp.float32)], axis=1)

    return (w1, b1, w2, b2, wh, bh, lo, hi)


def reference(state, params, out):
    # Pure-JAX f32 reference using the same (bf16-rounded) weight values.
    w1, b1, w2, b2, wh, bh, _, _ = params
    h1 = jnp.maximum(state @ w1.astype(jnp.float32) + b1, 0.0)
    h2 = jnp.maximum(h1 @ w2.astype(jnp.float32) + b2, 0.0)
    heads = h2 @ wh.astype(jnp.float32) + bh
    mean = heads[:, :out]
    log_std = jnp.clip(heads[:, out:], LOG_SIG_MIN, LOG_SIG_MAX)
    return mean, log_std


if __name__ == "__main__":
    key = jax.random.PRNGKey(0)
    k_state, k_params = jax.random.split(key)

    B, inp, out = 8, 32, 8          # small shapes consistent with the module
    state = jax.random.normal(k_state, (B, inp), jnp.float32)
    params = init_params(k_params, inp, out)

    fwd = jax.jit(functools.partial(gaussian_policy_flat, out=out))
    mean, log_std = jax.block_until_ready(fwd(state, params))

    ref_mean, ref_log_std = reference(state, params, out)
    assert mean.shape == (B, out) and log_std.shape == (B, out)
    # bf16 activations/weights with f32 accumulation: relaxed tolerance.
    assert jnp.allclose(mean, ref_mean, atol=2e-2, rtol=2e-2)
    assert jnp.allclose(log_std, ref_log_std, atol=2e-2, rtol=2e-2)
    assert bool(jnp.all(log_std <= LOG_SIG_MAX)) and bool(jnp.all(log_std >= LOG_SIG_MIN))

    print("KERNEL_OK")
</pallas_src>

<mosaic_0001>
module attributes {stable_mosaic.version = 11 : i64} {
  func.func @_policy_kernel(%arg0: i32, %arg1: memref<8x32xf32, #tpu.memory_space<vmem>>, %arg2: memref<32x256xbf16, #tpu.memory_space<vmem>>, %arg3: memref<1x256xf32, #tpu.memory_space<vmem>>, %arg4: memref<256x256xbf16, #tpu.memory_space<vmem>>, %arg5: memref<1x256xf32, #tpu.memory_space<vmem>>, %arg6: memref<256x16xbf16, #tpu.memory_space<vmem>>, %arg7: memref<1x16xf32, #tpu.memory_space<vmem>>, %arg8: memref<1x16xf32, #tpu.memory_space<vmem>>, %arg9: memref<1x16xf32, #tpu.memory_space<vmem>>, %arg10: memref<8x16xf32, #tpu.memory_space<vmem>>) attributes {dimension_semantics = [#tpu.dimension_semantics<parallel>], iteration_bounds = array<i64: 1>, scalar_prefetch = 0 : i64, scratch_operands = 0 : i64, tpu.core_type = #tpu.core_type<tc>, window_params = [{transform_indices = @transform_0, window_bounds = array<i64: 8, 32>}, {pipeline_mode = #tpu.pipeline_mode<synchronous>, transform_indices = @transform_1, window_bounds = array<i64: 32, 256>}, {pipeline_mode = #tpu.pipeline_mode<synchronous>, transform_indices = @transform_2, window_bounds = array<i64: 1, 256>}, {pipeline_mode = #tpu.pipeline_mode<synchronous>, transform_indices = @transform_3, window_bounds = array<i64: 256, 256>}, {pipeline_mode = #tpu.pipeline_mode<synchronous>, transform_indices = @transform_4, window_bounds = array<i64: 1, 256>}, {pipeline_mode = #tpu.pipeline_mode<synchronous>, transform_indices = @transform_5, window_bounds = array<i64: 256, 16>}, {pipeline_mode = #tpu.pipeline_mode<synchronous>, transform_indices = @transform_6, window_bounds = array<i64: 1, 16>}, {pipeline_mode = #tpu.pipeline_mode<synchronous>, transform_indices = @transform_7, window_bounds = array<i64: 1, 16>}, {pipeline_mode = #tpu.pipeline_mode<synchronous>, transform_indices = @transform_8, window_bounds = array<i64: 1, 16>}, {transform_indices = @transform_9, window_bounds = array<i64: 8, 16>}]} {
    %c0 = arith.constant 0 : index
    %c0_0 = arith.constant 0 : index
    %0 = vector.load %arg1[%c0, %c0_0] : memref<8x32xf32, #tpu.memory_space<vmem>>, vector<8x32xf32>
    %1 = arith.truncf %0 : vector<8x32xf32> to vector<8x32xbf16>
    %c0_1 = arith.constant 0 : index
    %c0_2 = arith.constant 0 : index
    %2 = vector.load %arg2[%c0_1, %c0_2] : memref<32x256xbf16, #tpu.memory_space<vmem>>, vector<32x256xbf16>
    %cst = arith.constant dense<0.000000e+00> : vector<8x256xf32>
    %3 = tpu.matmul %1, %2, %cst {dimension_numbers = #tpu.dot_dimension_numbers<[1], [0], [0], [1], [0, 0, 1, 1], [], []>} : vector<8x32xbf16>, vector<32x256xbf16>, vector<8x256xf32> -> vector<8x256xf32>
    %c0_3 = arith.constant 0 : index
    %c0_4 = arith.constant 0 : index
    %4 = vector.load %arg3[%c0_3, %c0_4] : memref<1x256xf32, #tpu.memory_space<vmem>>, vector<1x256xf32>
    %5 = vector.broadcast %4 : vector<1x256xf32> to vector<8x256xf32>
    %6 = arith.addf %3, %5 : vector<8x256xf32>
    %cst_5 = arith.constant 0.000000e+00 : f32
    %7 = vector.broadcast %cst_5 : f32 to vector<8x256xf32>
    %8 = arith.maximumf %6, %7 : vector<8x256xf32>
    %9 = arith.truncf %8 : vector<8x256xf32> to vector<8x256xbf16>
    %c0_6 = arith.constant 0 : index
    %c0_7 = arith.constant 0 : index
    %10 = vector.load %arg4[%c0_6, %c0_7] : memref<256x256xbf16, #tpu.memory_space<vmem>>, vector<256x256xbf16>
    %cst_8 = arith.constant dense<0.000000e+00> : vector<8x256xf32>
    %11 = tpu.matmul %9, %10, %cst_8 {dimension_numbers = #tpu.dot_dimension_numbers<[1], [0], [0], [1], [0, 0, 1, 1], [], []>} : vector<8x256xbf16>, vector<256x256xbf16>, vector<8x256xf32> -> vector<8x256xf32>
    %c0_9 = arith.constant 0 : index
    %c0_10 = arith.constant 0 : index
    %12 = vector.load %arg5[%c0_9, %c0_10] : memref<1x256xf32, #tpu.memory_space<vmem>>, vector<1x256xf32>
    %13 = vector.broadcast %12 : vector<1x256xf32> to vector<8x256xf32>
    %14 = arith.addf %11, %13 : vector<8x256xf32>
    %cst_11 = arith.constant 0.000000e+00 : f32
    %15 = vector.broadcast %cst_11 : f32 to vector<8x256xf32>
    %16 = arith.maximumf %14, %15 : vector<8x256xf32>
    %17 = arith.truncf %16 : vector<8x256xf32> to vector<8x256xbf16>
    %c0_12 = arith.constant 0 : index
    %c0_13 = arith.constant 0 : index
    %18 = vector.load %arg6[%c0_12, %c0_13] : memref<256x16xbf16, #tpu.memory_space<vmem>>, vector<256x16xbf16>
    %cst_14 = arith.constant dense<0.000000e+00> : vector<8x16xf32>
    %19 = tpu.matmul %17, %18, %cst_14 {dimension_numbers = #tpu.dot_dimension_numbers<[1], [0], [0], [1], [0, 0, 1, 1], [], []>} : vector<8x256xbf16>, vector<256x16xbf16>, vector<8x16xf32> -> vector<8x16xf32>
    %c0_15 = arith.constant 0 : index
    %c0_16 = arith.constant 0 : index
    %20 = vector.load %arg7[%c0_15, %c0_16] : memref<1x16xf32, #tpu.memory_space<vmem>>, vector<1x16xf32>
    %21 = vector.broadcast %20 : vector<1x16xf32> to vector<8x16xf32>
    %22 = arith.addf %19, %21 : vector<8x16xf32>
    %c0_17 = arith.constant 0 : index
    %c0_18 = arith.constant 0 : index
    %23 = vector.load %arg8[%c0_17, %c0_18] : memref<1x16xf32, #tpu.memory_space<vmem>>, vector<1x16xf32>
    %24 = vector.broadcast %23 : vector<1x16xf32> to vector<8x16xf32>
    %25 = arith.maximumf %22, %24 : vector<8x16xf32>
    %c0_19 = arith.constant 0 : index
    %c0_20 = arith.constant 0 : index
    %26 = vector.load %arg9[%c0_19, %c0_20] : memref<1x16xf32, #tpu.memory_space<vmem>>, vector<1x16xf32>
    %27 = vector.broadcast %26 : vector<1x16xf32> to vector<8x16xf32>
    %28 = arith.minimumf %25, %27 : vector<8x16xf32>
    %c0_21 = arith.constant 0 : index
    %c0_22 = arith.constant 0 : index
    %29 = vector.load %arg10[%c0_21, %c0_22] : memref<8x16xf32, #tpu.memory_space<vmem>>, vector<8x16xf32>
    tpu.vector_store %arg10[%c0_21, %c0_22], %28 {strides = array<i32>} : memref<8x16xf32, #tpu.memory_space<vmem>>, vector<8x16xf32>,
    return
  }
  func.func @transform_0(%arg0: i32) -> (i32, i32) {
    %c0_i32 = arith.constant 0 : i32
    %c0_i32_0 = arith.constant 0 : i32
    return %arg0, %c0_i32 : i32, i32
  }
  func.func @transform_1(%arg0: i32) -> (i32, i32) {
    %c0_i32 = arith.constant 0 : i32
    %c0_i32_0 = arith.constant 0 : i32
    %c0_i32_1 = arith.constant 0 : i32
    return %c0_i32, %c0_i32_0 : i32, i32
  }
  func.func @transform_2(%arg0: i32) -> (i32, i32) {
    %c0_i32 = arith.constant 0 : i32
    %c0_i32_0 = arith.constant 0 : i32
    %c0_i32_1 = arith.constant 0 : i32
    return %c0_i32, %c0_i32_0 : i32, i32
  }
  func.func @transform_3(%arg0: i32) -> (i32, i32) {
    %c0_i32 = arith.constant 0 : i32
    %c0_i32_0 = arith.constant 0 : i32
    %c0_i32_1 = arith.constant 0 : i32
    return %c0_i32, %c0_i32_0 : i32, i32
  }
  func.func @transform_4(%arg0: i32) -> (i32, i32) {
    %c0_i32 = arith.constant 0 : i32
    %c0_i32_0 = arith.constant 0 : i32
    %c0_i32_1 = arith.constant 0 : i32
    return %c0_i32, %c0_i32_0 : i32, i32
  }
  func.func @transform_5(%arg0: i32) -> (i32, i32) {
    %c0_i32 = arith.constant 0 : i32
    %c0_i32_0 = arith.constant 0 : i32
    %c0_i32_1 = arith.constant 0 : i32
    return %c0_i32, %c0_i32_0 : i32, i32
  }
  func.func @transform_6(%arg0: i32) -> (i32, i32) {
    %c0_i32 = arith.constant 0 : i32
    %c0_i32_0 = arith.constant 0 : i32
    %c0_i32_1 = arith.constant 0 : i32
    return %c0_i32, %c0_i32_0 : i32, i32
  }
  func.func @transform_7(%arg0: i32) -> (i32, i32) {
    %c0_i32 = arith.constant 0 : i32
    %c0_i32_0 = arith.constant 0 : i32
    %c0_i32_1 = arith.constant 0 : i32
    return %c0_i32, %c0_i32_0 : i32, i32
  }
  func.func @transform_8(%arg0: i32) -> (i32, i32) {
    %c0_i32 = arith.constant 0 : i32
    %c0_i32_0 = arith.constant 0 : i32
    %c0_i32_1 = arith.constant 0 : i32
    return %c0_i32, %c0_i32_0 : i32, i32
  }
  func.func @transform_9(%arg0: i32) -> (i32, i32) {
    %c0_i32 = arith.constant 0 : i32
    %c0_i32_0 = arith.constant 0 : i32
    return %arg0, %c0_i32 : i32, i32
  }
}

</mosaic_0001>

<bundles_post_ra>
// kernel: gaussian_policy_flat.1
= control target key start
LH: loop header
LB: loop body
LE: loop exit
PB: predicated region body
PF: predicated region fallthrough
CT: control target
= control target key end

     0   :  { %14 = vsyncpa [#allocation3], 0  ;;  %s757_s30 = smov [#allocation2]   ;;  %s904_s0 = inlined_call_operand.vmem [shape: f32[8,32], index: 0, kind: input, shape index: {}]   ;;  %s905_s1 = inlined_call_operand.vmem [shape: bf16[32,256], index: 1, kind: input, shape index: {}]   ;;  %s906_s2 = inlined_call_operand.vmem [shape: f32[1,256], index: 2, kind: input, shape index: {}]   ;;  %s907_s3 = inlined_call_operand.hbm [shape: bf16[256,256], index: 3, kind: input, shape index: {}]   ;;  %s908_s4 = inlined_call_operand.vmem [shape: f32[1,256], index: 4, kind: input, shape index: {}]   ;;  %s909_s5 = inlined_call_operand.vmem [shape: bf16[256,16], index: 5, kind: input, shape index: {}]   ;;  %s910_s6 = inlined_call_operand.vmem [shape: f32[1,16], index: 6, kind: input, shape index: {}]   ;;  %s911_s7 = inlined_call_operand.vmem [shape: f32[1,16], index: 7, kind: input, shape index: {}]   ;;  %s912_s8 = inlined_call_operand.vmem [shape: f32[1,16], index: 8, kind: input, shape index: {}]   ;;  %s913_s9 = inlined_call_operand.vmem [shape: f32[8,16], index: 9, kind: output, shape index: {}]  }
   0x1   :  { %s26_s10 = sshll.u32 %s757_s30, 4  ;;  %s733_s13 = scalar_lea.hbm %s907_s3, 4096  ;;  %s27_s10 = int_to_ptr.vmem [resolvable:$true] %s26_s10 }
   0x2   :  { %p734_p0 = scmp.ne.s32.totalorder %s907_s3, %s733_s13  ;;  %p737_p1 = scmp.lt.u32.totalorder %s733_s13, %s907_s3 }
   0x4   :  { %p739_p2 = pnand %p737_p1, %p734_p0 }
   0x6   :  { %742 = shalt.err (!%p739_p2)
}
   0x7   :  { %s743_s18 = scalar_lea.vmem %s27_s10, 4096  ;;  %p748_p4 = scmp.lt.s32.totalorder %s27_s10, %s27_s10 }
   0x8   :  { %p744_p3 = scmp.ne.s32.totalorder %s27_s10, %s743_s18  ;;  %p749_p5 = scmp.lt.s32.totalorder %s743_s18, %s743_s18 }
   0xa   :  { %p750_p6 = por %p749_p5, %p748_p4 }
   0xc   :  { %p751_p7 = pnand %p750_p6, %p744_p3 }
   0xe   :  { %754 = shalt.err (!%p751_p7)
}
   0xf   :  { %s758_s19 = smov 128   ;;  %s759_s20 = smov 8  }
  0x10   :  { %32 = dma.hbm_to_vmem [thread:$0]  %s907_s3, 4096, %s27_s10, [#allocation3], %s758_s19, %s758_s19, %s759_s20  }
  0x11   :  { %755 = dma.done.wait [#allocation3], 4096  }
  0x12   :  { %756 = vsyncadd [#allocation3], 4294963200  ;;  %v760_v0 = vmov 0   ;;  %v663_v1 = vld [vmem:[%s905_s1 + $0x4] ss:$8 sps:$4 sm:$0xff]   ;;  %vm85_vm0 = vcmask 261120   ;;  %v55_v51 = vlaneseq }
  0x13   :  { %121 = vmatprep.mubr.bf16.mxu0 %v760_v0  ;;  %v665_v2 = vld [vmem:[%s905_s1] ss:$8 sps:$4 sm:$0xff]   ;;  %89 = vmatprep.subr.bf16.mxu0 %v663_v1  ;;  %v666_v3 = vld [vmem:[%s905_s1 + $0x14] ss:$8 sps:$4 sm:$0xff]   ;;  %v668_v4 = vld [vmem:[%s905_s1 + $0x10] ss:$8 sps:$4 sm:$0xff]  }
  0x14   :  { %v47_v5 = vld [vmem:[%s904_s0] sm:$0xff]  ;;  %90 = vmatpush1.bf16.msra.mxu0 %v665_v2  ;;  %v672_v8 = vld [vmem:[#allocation2 + $0x14] ss:$8 sps:$4 sm:$0xff]   ;;  %v674_v10 = vld [vmem:[#allocation2 + $0x10] ss:$8 sps:$4 sm:$0xff]   ;;  %v56_v52 = vshrl.u32 %v55_v51, 7 }
  0x15   :  { %v669_v6 = vld [vmem:[#allocation2 + $0x4] ss:$8 sps:$4 sm:$0xff]   ;;  %91 = vmatprep.subr.bf16.mxu0 %v666_v3  ;;  %v671_v7 = vld [vmem:[#allocation2] ss:$8 sps:$4 sm:$0xff]   ;;  %v48_v9 = vpack.c.bf16 %v47_v5, %v47_v5  ;;  %v678_v13 = vld [vmem:[#allocation2 + $0x34] ss:$8 sps:$4 sm:$0xff]  }
  0x16   :  { %338 = vmatprep.subr.bf16.mxu1 %v669_v6  ;;  %v675_v11 = vld [vmem:[#allocation2 + $0x24] ss:$8 sps:$4 sm:$0xff]   ;;  %v677_v12 = vld [vmem:[#allocation2 + $0x20] ss:$8 sps:$4 sm:$0xff]   ;;  %v680_v14 = vld [vmem:[#allocation2 + $0x30] ss:$8 sps:$4 sm:$0xff]  }
  0x17   :  { %339 = vmatpush1.bf16.msra.mxu1 %v671_v7  ;;  %v681_v15 = vld [vmem:[#allocation2 + $0x44] ss:$8 sps:$4 sm:$0xff]   ;;  %v683_v16 = vld [vmem:[#allocation2 + $0x40] ss:$8 sps:$4 sm:$0xff]   ;;  %v684_v17 = vld [vmem:[#allocation2 + $0x54] ss:$8 sps:$4 sm:$0xff]  }
  0x18   :  { %92 = vmatpush1.bf16.msra.mxu0 %v668_v4  ;;  %340 = vmatprep.subr.bf16.mxu1 %v672_v8  ;;  %v686_v18 = vld [vmem:[#allocation2 + $0x50] ss:$8 sps:$4 sm:$0xff]   ;;  %v687_v19 = vld [vmem:[#allocation2 + $0x64] ss:$8 sps:$4 sm:$0xff]   ;;  %v689_v20 = vld [vmem:[#allocation2 + $0x60] ss:$8 sps:$4 sm:$0xff]  }
  0x19   :  { %v690_v21 = vld [vmem:[#allocation2 + $0x74] ss:$8 sps:$4 sm:$0xff]   ;;  %v692_v22 = vld [vmem:[#allocation2 + $0x70] ss:$8 sps:$4 sm:$0xff]   ;;  %v693_v23 = vld [vmem:[#allocation2 + $0x84] ss:$8 sps:$4 sm:$0xff]  }
  0x1a   :  { %v695_v24 = vld [vmem:[#allocation2 + $0x80] ss:$8 sps:$4 sm:$0xff]   ;;  %v696_v25 = vld [vmem:[#allocation2 + $0x94] ss:$8 sps:$4 sm:$0xff]   ;;  %v698_v26 = vld [vmem:[#allocation2 + $0x90] ss:$8 sps:$4 sm:$0xff]  }
  0x1b   :  { %585 = vmatmul.mubr.msk.bf16.vlgmr.msra.gmra.mrb[0].mxu0 %vm85_vm0, %v48_v9  ;;  %341 = vmatpush1.bf16.msra.mxu1 %v674_v10  ;;  %v699_v27 = vld [vmem:[#allocation2 + $0xa4] ss:$8 sps:$4 sm:$0xff]   ;;  %v701_v28 = vld [vmem:[#allocation2 + $0xa0] ss:$8 sps:$4 sm:$0xff]   ;;  %v702_v29 = vld [vmem:[#allocation2 + $0xb4] ss:$8 sps:$4 sm:$0xff]  }
  0x1c   :  { %342 = vmatprep.subr.bf16.mxu1 %v675_v11  ;;  %v704_v30 = vld [vmem:[#allocation2 + $0xb0] ss:$8 sps:$4 sm:$0xff]   ;;  %v705_v31 = vld [vmem:[#allocation2 + $0xc4] ss:$8 sps:$4 sm:$0xff]   ;;  %v707_v32 = vld [vmem:[#allocation2 + $0xc0] ss:$8 sps:$4 sm:$0xff]  }
  0x1d   :  { %v708_v33 = vld [vmem:[#allocation2 + $0xd4] ss:$8 sps:$4 sm:$0xff]   ;;  %v710_v34 = vld [vmem:[#allocation2 + $0xd0] ss:$8 sps:$4 sm:$0xff]   ;;  %v711_v35 = vld [vmem:[#allocation2 + $0xe4] ss:$8 sps:$4 sm:$0xff]  }
  0x1e   :  { %v713_v36 = vld [vmem:[#allocation2 + $0xe0] ss:$8 sps:$4 sm:$0xff]   ;;  %v714_v37 = vld [vmem:[#allocation2 + $0xf4] ss:$8 sps:$4 sm:$0xff]   ;;  %v716_v38 = vld [vmem:[#allocation2 + $0xf0] ss:$8 sps:$4 sm:$0xff]  }
  0x1f   :  { %343 = vmatpush1.bf16.msra.mxu1 %v677_v12  ;;  %v717_v39 = vld [vmem:[%s909_s5 + $0x40] sm:$0xff]   ;;  %v719_v41 = vld [vmem:[%s909_s5 + $0x48] sm:$0xff]   ;;  %v721_v43 = vld [vmem:[%s909_s5 + $0x50] sm:$0xff]   ;;  %v57_v53 = vsub.s32 0, %v56_v52  ;;  %v61_v55 = vsub.s32 1, %v56_v52  ;;  %vm574_vm1 = vcmask 130048  }
  0x20   :  { %344 = vmatprep.subr.bf16.mxu1 %v678_v13  ;;  %v718_v40 = vld [vmem:[%s909_s5] sm:$0xff]   ;;  %637 = vmatprep.subr.bf16.mxu0 %v717_v39  ;;  %v720_v42 = vld [vmem:[%s909_s5 + $0x8] sm:$0xff]   ;;  %v722_v44 = vld [vmem:[%s909_s5 + $0x10] sm:$0xff]  }
  0x21   :  { %638 = vmatpush3.bf16.msra.mxu0 %v718_v40  ;;  %v723_v45 = vld [vmem:[%s909_s5 + $0x58] sm:$0xff]   ;;  %v725_v47 = vld [vmem:[%s909_s5 + $0x60] sm:$0xff]   ;;  %v727_v49 = vld [vmem:[%s909_s5 + $0x68] sm:$0xff]  }
  0x22   :  { %639 = vmatprep.subr.bf16.mxu0 %v719_v41  ;;  %v724_v46 = vld [vmem:[%s909_s5 + $0x18] sm:$0xff]   ;;  %v726_v48 = vld [vmem:[%s909_s5 + $0x20] sm:$0xff]   ;;  %v728_v50 = vld [vmem:[%s909_s5 + $0x28] sm:$0xff]  }
  0x23   :  { %345 = vmatpush1.bf16.msra.mxu1 %v680_v14  ;;  %v53_v54 = vld [vmem:[%s906_s2] sm:$0x3]  ;;  %v729_v4 = vld [vmem:[%s909_s5 + $0x70] sm:$0xff]   ;;  %v731_v6 = vld [vmem:[%s909_s5 + $0x78] sm:$0xff]  }
  0x24   :  { %346 = vmatprep.subr.bf16.mxu1 %v681_v15  ;;  %v58_v56 = vrot.slane %v53_v54, %v57_v53  ;;  %v62_v57 = vrot.slane %v53_v54, %v61_v55  ;;  %v730_v5 = vld [vmem:[%s909_s5 + $0x30] sm:$0xff]   ;;  %v732_v7 = vld [vmem:[%s909_s5 + $0x38] sm:$0xff]   ;;  %v166_v8 = vld [vmem:[%s908_s4] sm:$0x3] }
  0x25   :  { %640 = vmatpush3.bf16.msra.mxu0 %v720_v42  ;;  %v171_v9 = vrot.slane %v166_v8, %v57_v53  ;;  %v175_v10 = vrot.slane %v166_v8, %v61_v55 }
  0x26   :  { %641 = vmatprep.subr.bf16.mxu0 %v721_v43 }
  0x27   :  { %347 = vmatpush1.bf16.msra.mxu1 %v683_v16 }
  0x28   :  { %348 = vmatprep.subr.bf16.mxu1 %v684_v17 }
  0x29   :  { %642 = vmatpush3.bf16.msra.mxu0 %v722_v44 }
  0x2a   :  { %643 = vmatprep.subr.bf16.mxu0 %v723_v45 }
  0x2b   :  { %349 = vmatpush1.bf16.msra.mxu1 %v686_v18 }
  0x2c   :  { %350 = vmatprep.subr.bf16.mxu1 %v687_v19 }
  0x2d   :  { %644 = vmatpush3.bf16.msra.mxu0 %v724_v46 }
  0x2e   :  { %645 = vmatprep.subr.bf16.mxu0 %v725_v47 }
  0x2f   :  { %351 = vmatpush1.bf16.msra.mxu1 %v689_v20 }
  0x30   :  { %352 = vmatprep.subr.bf16.mxu1 %v690_v21 }
  0x31   :  { %646 = vmatpush3.bf16.msra.mxu0 %v726_v48 }
  0x32   :  { %647 = vmatprep.subr.bf16.mxu0 %v727_v49 }
  0x33   :  { %353 = vmatpush1.bf16.msra.mxu1 %v692_v22  ;;  %v618_v22 = vld [vmem:[%s910_s6] ss:$0 sm:$0xff] }
  0x34   :  { %354 = vmatprep.subr.bf16.mxu1 %v693_v23 }
  0x35   :  { %648 = vmatpush3.bf16.msra.mxu0 %v728_v50 }
  0x36   :  { %649 = vmatprep.subr.bf16.mxu0 %v729_v4 }
  0x37   :  { %355 = vmatpush1.bf16.msra.mxu1 %v695_v24 }
  0x38   :  { %356 = vmatprep.subr.bf16.mxu1 %v696_v25 }
  0x39   :  { %650 = vmatpush3.bf16.msra.mxu0 %v730_v5 }
  0x3a   :  { %651 = vmatprep.subr.bf16.mxu0 %v731_v6 }
  0x3b   :  { %357 = vmatpush1.bf16.msra.mxu1 %v698_v26  ;;  %v635_v26 = vld [vmem:[%s911_s7] ss:$0 sm:$0xff] }
  0x3c   :  { %358 = vmatprep.subr.bf16.mxu1 %v699_v27 }
  0x3d   :  { %652 = vmatpush3.bf16.msra.mxu0 %v732_v7 }
  0x3f   :  { %359 = vmatpush1.bf16.msra.mxu1 %v701_v28 }
  0x40   :  { %360 = vmatprep.subr.bf16.mxu1 %v702_v29  ;;  %v636_v29 = vld [vmem:[%s912_s8] ss:$0 sm:$0xff] }
  0x43   :  { %361 = vmatpush1.bf16.msra.mxu1 %v704_v30 }
  0x44   :  { %362 = vmatprep.subr.bf16.mxu1 %v705_v31 }
  0x47   :  { %363 = vmatpush1.bf16.msra.mxu1 %v707_v32 }
  0x48   :  { %364 = vmatprep.subr.bf16.mxu1 %v708_v33 }
  0x4b   :  { %365 = vmatpush1.bf16.msra.mxu1 %v710_v34 }
  0x4c   :  { %366 = vmatprep.subr.bf16.mxu1 %v711_v35 }
  0x4f   :  { %367 = vmatpush1.bf16.msra.mxu1 %v713_v36 }
  0x50   :  { %368 = vmatprep.subr.bf16.mxu1 %v714_v37 }
  0x53   :  { %369 = vmatpush1.bf16.msra.mxu1 %v716_v38 }
  0xee   :  { %v123_v58 = vpop.f32.mrb[0].mxu0 }
  0xef   :  { %v124_v59 = vadd.f32 %v123_v58, %v58_v56  ;;  %v125_v60 = vpop.f32.mrb[1].mxu0 }
  0xf0   :  { %v126_v61 = vadd.f32 %v125_v60, %v62_v57  ;;  %v127_v62 = vpop.f32.mrb[2].mxu0 }
  0xf1   :  { %v130_v63 = vmax.f32 %v124_v59, 0.0  ;;  %v128_v0 = vpop.f32.mrb[3].mxu0 }
  0xf2   :  { %v131_v1 = vmax.f32 %v126_v61, 0.0 }
  0xf3   :  { %v132_v3 = vpack.c.bf16 %v130_v63, %v130_v63 }
  0xf4   :  { %v133_v2 = vpack.c.bf16 %v131_v1, %v131_v1 }
  0xf6   :  { %370 = vmatprep.mubr.bf16.mxu1 %v133_v2 }
  0xf7   :  { %371 = vmatmul.mubr.bf16.vlgmr.msra.gmra.mrb[0].mxu1 %v132_v3 }
 0x1ca   :  { %v372_v11 = vpop.f32.mrb[0].mxu1 }
 0x1cb   :  { %v373_v12 = vadd.f32 %v372_v11, %v171_v9  ;;  %v374_v13 = vpop.f32.mrb[1].mxu1 }
 0x1cc   :  { %v375_v14 = vadd.f32 %v374_v13, %v175_v10  ;;  %v376_v15 = vpop.f32.mrb[2].mxu1 }
 0x1cd   :  { %v379_v16 = vmax.f32 %v373_v12, 0.0  ;;  %v377_v17 = vpop.f32.mrb[3].mxu1 }
 0x1ce   :  { %v380_v18 = vmax.f32 %v375_v14, 0.0 }
 0x1cf   :  { %v381_v20 = vpack.c.bf16 %v379_v16, %v379_v16 }
 0x1d0   :  { %v382_v19 = vpack.c.bf16 %v380_v18, %v380_v18 }
 0x1d2   :  { %550 = vmatprep.mubr.bf16.mxu0 %v382_v19 }
 0x1d3   :  { %551 = vmatmul.mubr.bf16.vlgmr.msra.gmra.mrb[4].mxu0 %v381_v20 }
 0x2a6   :  { %v653_v21 = vpop.f32.mrb[4].mxu0 }
 0x2a7   :  { %v654_v23 = vpop.f32.mrb[5].mxu0 }
 0x2a8   :  { %v655_v24 = vadd.f32 %v654_v23, %v653_v21  ;;  %v656_v25 = vpop.f32.mrb[6].mxu0 }
 0x2a9   :  { %v657_v27 = vpop.f32.mrb[7].mxu0 }
 0x2aa   :  { %v553_v28 = vadd.f32 %v655_v24, %v618_v22 }
 0x2ac   :  { %v565_v30 = vmax.f32 %v553_v28, %v635_v26 }
 0x2ae   :  { %v573_v31 = vmin.f32 %v565_v30, %v636_v29 }
 0x2b0   :  { %575 = vst.msk [vmem:[%s913_s9] sm:$0xff] %vm574_vm1, %v573_v31 }
 0x2b1   :  { %580 = vsyncpa [#allocation3], 1 }

</bundles_post_ra>
